<compile_context>
chip_gen: v7x
topology: tpu7x:2x2x1
jax: 0.10.0
libtpu: 0.0.40
codegen_flags: <defaults>
</compile_context>

<pallas_src>
import jax
import jax.numpy as jnp
from jax import lax
from jax.experimental import pallas as pl
from jax.experimental.pallas import tpu as pltpu

_LANE = 128
_SUB = 8


def _rup(v, m):
    return -(-v // m) * m


# ---------------------------------------------------------------------------
# Kernels
# ---------------------------------------------------------------------------
def _dm_fused_kernel(x_ref, ids_ref, wp_ref, out_ref):
    """x_ref: (TB, E) f32, ids_ref: (TB, S) i32,
    wp_ref: (E, Nw) f32 (VMEM-resident across the whole grid),
    out_ref: (TB, S) f32."""
    tb, s_dim = out_ref.shape
    nw = wp_ref.shape[1]

    x = x_ref[...]                                                    # (TB, E)
    # One MXU matmul per block: scores against the whole vocabulary.
    full = jnp.dot(x, wp_ref[...], preferred_element_type=jnp.float32)  # (TB, Nw)

    ids = ids_ref[...]                                                # (TB, S)
    word_iota = lax.broadcasted_iota(jnp.int32, (tb, nw), 1)          # (TB, Nw)
    cols = []
    for s in range(s_dim):        # S is small & static (1 target + noise)
        sel = ids[:, s:s + 1] == word_iota                            # (TB, Nw)
        cols.append(jnp.sum(jnp.where(sel, full, 0.0), axis=1, keepdims=True))
    out_ref[...] = jnp.concatenate(cols, axis=1).astype(out_ref.dtype)


def _dm_pregather_kernel(x_ref, wp_ref, out_ref):
    """Fallback: x_ref (TB, E), wp_ref (TB, S, E) pre-gathered rows of Wp.T."""
    x = x_ref[...]
    out_ref[...] = jnp.sum(x[:, None, :] * wp_ref[...], axis=-1).astype(out_ref.dtype)


# ---------------------------------------------------------------------------
# Sizing helpers (padding-aware, per-generation)
# ---------------------------------------------------------------------------
def _vmem_limit_bytes():
    """Scoped-VMEM limit: ~70% of physical capacity, capped at 64 MiB.
    v5e/v6e: 128 MiB physical -> 64 MiB limit; v7x: 64 MiB -> ~44 MiB."""
    cap = 64 * 1024 * 1024
    try:
        cap = int(getattr(pltpu.get_tpu_info(), "vmem_capacity_bytes", cap))
    except Exception:
        pass
    return int(min(64 * 1024 * 1024, cap * 7 // 10))


def _pick_block_b(B, E, S, nw_resident, vmem_limit):
    """Largest TB in {8,...,512} whose padding-aware, double-buffered footprint
    (plus the VMEM-resident Wp table and in-kernel temporaries for the fused
    path) stays inside ~half the scoped VMEM limit."""
    e_pad = _rup(E, _LANE)
    s_lane = _rup(S, _LANE)
    if nw_resident:
        nw_pad = _rup(nw_resident, _LANE)
        table = 2 * _rup(E, _SUB) * nw_pad * 4           # double-buffered Wp
        # x + ids + out blocks (double-buffered) + ~4 (TB, Nw) f32 temporaries.
        per_row = 2 * (e_pad + 2 * s_lane) * 4 + 4 * nw_pad * 4
    else:
        table = 0
        s_sub = _rup(S, _SUB)
        # x + pre-gathered (S, E) rows + out blocks (double-buffered) + bcast tmp.
        per_row = 2 * (e_pad + s_sub * e_pad + s_lane) * 4 + s_sub * e_pad * 4

    budget = max(vmem_limit // 2 - table, 1 << 20)
    tb_cap = min(512, _rup(max(B, _SUB), _SUB))
    tb = _SUB
    for cand in (8, 16, 32, 64, 128, 256, 512):
        if cand <= tb_cap and cand * per_row <= budget:
            tb = cand
    # v7x megacore: keep >= 2 grid blocks when the batch allows it so that
    # dimension_semantics=("parallel",) can feed both TensorCores.
    if B > _SUB and pl.cdiv(B, tb) < 2:
        tb = max(_SUB, _rup(pl.cdiv(B, 2), _SUB))
    return tb


# ---------------------------------------------------------------------------
# Forward wrapper
# ---------------------------------------------------------------------------
def dm_forward(D, W, Wp, ctx_ids, doc_ids, target_and_noise_ids, *,
               block_b=None, use_fused=None):
    """Pallas-backed DM forward.

    D : (n_docs, E)   W : (n_words + 1, E)   Wp : (E, n_words)
    ctx_ids              : (B, C)  int  indices into W (row n_words == pad)
    doc_ids              : (B,)    int  indices into D
    target_and_noise_ids : (B, S)  int  column indices into Wp
    returns              : (B, S)  float32
    """
    B, _ = ctx_ids.shape
    S = target_and_noise_ids.shape[1]
    E, Nw = Wp.shape

    # Glue in plain JAX: XLA fuses the row gathers + reduce + add, so the
    # kernel receives a single (B, E) operand instead of (B, C+1, E) rows.
    x = (D[doc_ids] + jnp.sum(W[ctx_ids], axis=1)).astype(jnp.float32)   # (B, E)
    ids = target_and_noise_ids.astype(jnp.int32)                          # (B, S)

    vmem_limit = _vmem_limit_bytes()
    table_bytes = 2 * _rup(E, _SUB) * _rup(Nw, _LANE) * 4
    if use_fused is None:
        use_fused = table_bytes <= vmem_limit // 3

    TB = block_b if block_b is not None else _pick_block_b(
        B, E, S, Nw if use_fused else 0, vmem_limit)
    n_blocks = pl.cdiv(B, TB)
    B_pad = n_blocks * TB
    pad = B_pad - B
    if pad:
        x = jnp.pad(x, ((0, pad), (0, 0)))
        ids = jnp.pad(ids, ((0, pad), (0, 0)))   # index 0 is valid; rows sliced off

    params = pltpu.CompilerParams(
        dimension_semantics=("parallel",),       # shard blocked batch across TCs
        vmem_limit_bytes=vmem_limit,
    )

    if use_fused:
        out = pl.pallas_call(
            _dm_fused_kernel,
            out_shape=jax.ShapeDtypeStruct((B_pad, S), jnp.float32),
            grid_spec=pltpu.PrefetchScalarGridSpec(
                num_scalar_prefetch=0,
                grid=(n_blocks,),
                in_specs=[
                    pl.BlockSpec((TB, E), lambda b: (b, 0)),
                    pl.BlockSpec((TB, S), lambda b: (b, 0)),
                    # Whole projection matrix, constant block index -> DMA'd
                    # once and kept VMEM-resident for every grid step.
                    pl.BlockSpec((E, Nw), lambda b: (0, 0)),
                ],
                out_specs=pl.BlockSpec((TB, S), lambda b: (b, 0)),
            ),
            compiler_params=params,
        )(x, ids, Wp)
    else:
        # TODO(synk): for vocabularies too large for a VMEM-resident Wp the
        # right fix is a manual per-row DMA gather (memory_space=pl.ANY +
        # make_async_copy); this fallback keeps the simpler, validated
        # pre-gathered layout at the cost of a (B, S, E) HBM intermediate.
        wp_rows = Wp.T[ids]                                   # (B_pad, S, E)
        out = pl.pallas_call(
            _dm_pregather_kernel,
            out_shape=jax.ShapeDtypeStruct((B_pad, S), jnp.float32),
            grid_spec=pltpu.PrefetchScalarGridSpec(
                num_scalar_prefetch=0,
                grid=(n_blocks,),
                in_specs=[
                    pl.BlockSpec((TB, E), lambda b: (b, 0)),
                    pl.BlockSpec((TB, S, E), lambda b: (b, 0, 0)),
                ],
                out_specs=pl.BlockSpec((TB, S), lambda b: (b, 0)),
            ),
            compiler_params=params,
        )(x, wp_rows)

    return out[:B]


if __name__ == "__main__":
    # Small, deterministic setup consistent with the module's __init__.
    embedding_dim = 32
    n_docs = 16
    n_words = 64
    batch = 2
    n_ctx = 4
    n_samples = 8  # 1 target + 7 noise

    key = jax.random.PRNGKey(0)
    k_d, k_w, k_wp, k_ctx, k_doc, k_tgt = jax.random.split(key, 6)

    D = jax.random.normal(k_d, (n_docs, embedding_dim), dtype=jnp.float32)
    W = jnp.concatenate(
        [jax.random.normal(k_w, (n_words, embedding_dim), dtype=jnp.float32),
         jnp.zeros((1, embedding_dim), dtype=jnp.float32)],
        axis=0)                                                # (n_words+1, E)
    Wp = jax.random.normal(k_wp, (embedding_dim, n_words), dtype=jnp.float32)

    ctx_ids = jax.random.randint(k_ctx, (batch, n_ctx), 0, n_words + 1,
                                 dtype=jnp.int32)              # may hit pad row
    doc_ids = jax.random.randint(k_doc, (batch,), 0, n_docs, dtype=jnp.int32)
    target_and_noise_ids = jax.random.randint(
        k_tgt, (batch, n_samples), 0, n_words, dtype=jnp.int32)

    # Pure-JAX reference (mirrors the torch forward: column gather on Wp,
    # permute(1, 0, 2), bmm, squeeze).
    x_ref = D[doc_ids] + jnp.sum(W[ctx_ids], axis=1)                    # (B, E)
    wp_ref = jnp.transpose(jnp.take(Wp, target_and_noise_ids, axis=1),
                           (1, 0, 2))                                   # (B, E, S)
    ref = jnp.squeeze(jnp.einsum('bie,bes->bis', x_ref[:, None, :], wp_ref,
                                 precision=lax.Precision.HIGHEST))

    # Fused path (Wp VMEM-resident, MXU scoring).  The f32 MXU matmul may use
    # bf16 passes depending on the generation's default matmul precision, so
    # the tolerance is slightly looser than pure-f32.
    out = jax.block_until_ready(
        dm_forward(D, W, Wp, ctx_ids, doc_ids, target_and_noise_ids))
    assert out.shape == (batch, n_samples), out.shape
    assert jnp.allclose(out, ref, atol=2e-2, rtol=2e-2), "fused path mismatch"

    # Fallback path (pre-gathered Wp rows, pure-VPU f32 reduce).
    out_fb = jax.block_until_ready(
        dm_forward(D, W, Wp, ctx_ids, doc_ids, target_and_noise_ids,
                   use_fused=False))
    assert out_fb.shape == (batch, n_samples), out_fb.shape
    assert jnp.allclose(out_fb, ref, atol=1e-3, rtol=1e-3), "fallback path mismatch"

    print("KERNEL_OK")
</pallas_src>

<mosaic_0001>
module attributes {stable_mosaic.version = 11 : i64} {
  func.func @_dm_fused_kernel(%arg0: i32, %arg1: memref<8x32xf32, #tpu.memory_space<vmem>>, %arg2: memref<8x8xi32, #tpu.memory_space<vmem>>, %arg3: memref<32x64xf32, #tpu.memory_space<vmem>>, %arg4: memref<8x8xf32, #tpu.memory_space<vmem>>) attributes {dimension_semantics = [#tpu.dimension_semantics<parallel>], iteration_bounds = array<i64: 1>, scalar_prefetch = 0 : i64, scratch_operands = 0 : i64, tpu.core_type = #tpu.core_type<tc>, window_params = [{transform_indices = @transform_0, window_bounds = array<i64: 8, 32>}, {transform_indices = @transform_1, window_bounds = array<i64: 8, 8>}, {pipeline_mode = #tpu.pipeline_mode<synchronous>, transform_indices = @transform_2, window_bounds = array<i64: 32, 64>}, {transform_indices = @transform_3, window_bounds = array<i64: 8, 8>}]} {
    %c0 = arith.constant 0 : index
    %c0_0 = arith.constant 0 : index
    %0 = vector.load %arg1[%c0, %c0_0] : memref<8x32xf32, #tpu.memory_space<vmem>>, vector<8x32xf32>
    %c0_1 = arith.constant 0 : index
    %c0_2 = arith.constant 0 : index
    %1 = vector.load %arg3[%c0_1, %c0_2] : memref<32x64xf32, #tpu.memory_space<vmem>>, vector<32x64xf32>
    %cst = arith.constant dense<0.000000e+00> : vector<8x64xf32>
    %2 = tpu.matmul %0, %1, %cst {dimension_numbers = #tpu.dot_dimension_numbers<[1], [0], [0], [1], [0, 0, 1, 1], [], []>} : vector<8x32xf32>, vector<32x64xf32>, vector<8x64xf32> -> vector<8x64xf32>
    %c0_3 = arith.constant 0 : index
    %c0_4 = arith.constant 0 : index
    %3 = vector.load %arg2[%c0_3, %c0_4] : memref<8x8xi32, #tpu.memory_space<vmem>>, vector<8x8xi32>
    %4 = tpu.iota {dimensions = array<i32: 1>} : vector<8x64xi32>
    %5 = vector.extract_strided_slice %3 {offsets = [0, 0], sizes = [8, 1], strides = [1, 1]} : vector<8x8xi32> to vector<8x1xi32>
    %6 = vector.broadcast %5 : vector<8x1xi32> to vector<8x64xi32>
    %7 = arith.cmpi eq, %6, %4 : vector<8x64xi32>
    %cst_5 = arith.constant 0.000000e+00 : f32
    %8 = vector.broadcast %cst_5 : f32 to vector<8x64xf32>
    %9 = arith.select %7, %2, %8 : vector<8x64xi1>, vector<8x64xf32>
    %cst_6 = arith.constant dense<0.000000e+00> : vector<8xf32>
    %10 = vector.multi_reduction <add>, %9, %cst_6 [1] : vector<8x64xf32> to vector<8xf32>
    %11 = vector.shape_cast %10 : vector<8xf32> to vector<8x1xf32>
    %12 = vector.extract_strided_slice %3 {offsets = [0, 1], sizes = [8, 1], strides = [1, 1]} : vector<8x8xi32> to vector<8x1xi32>
    %13 = vector.broadcast %12 : vector<8x1xi32> to vector<8x64xi32>
    %14 = arith.cmpi eq, %13, %4 : vector<8x64xi32>
    %cst_7 = arith.constant 0.000000e+00 : f32
    %15 = vector.broadcast %cst_7 : f32 to vector<8x64xf32>
    %16 = arith.select %14, %2, %15 : vector<8x64xi1>, vector<8x64xf32>
    %cst_8 = arith.constant dense<0.000000e+00> : vector<8xf32>
    %17 = vector.multi_reduction <add>, %16, %cst_8 [1] : vector<8x64xf32> to vector<8xf32>
    %18 = vector.shape_cast %17 : vector<8xf32> to vector<8x1xf32>
    %19 = vector.extract_strided_slice %3 {offsets = [0, 2], sizes = [8, 1], strides = [1, 1]} : vector<8x8xi32> to vector<8x1xi32>
    %20 = vector.broadcast %19 : vector<8x1xi32> to vector<8x64xi32>
    %21 = arith.cmpi eq, %20, %4 : vector<8x64xi32>
    %cst_9 = arith.constant 0.000000e+00 : f32
    %22 = vector.broadcast %cst_9 : f32 to vector<8x64xf32>
    %23 = arith.select %21, %2, %22 : vector<8x64xi1>, vector<8x64xf32>
    %cst_10 = arith.constant dense<0.000000e+00> : vector<8xf32>
    %24 = vector.multi_reduction <add>, %23, %cst_10 [1] : vector<8x64xf32> to vector<8xf32>
    %25 = vector.shape_cast %24 : vector<8xf32> to vector<8x1xf32>
    %26 = vector.extract_strided_slice %3 {offsets = [0, 3], sizes = [8, 1], strides = [1, 1]} : vector<8x8xi32> to vector<8x1xi32>
    %27 = vector.broadcast %26 : vector<8x1xi32> to vector<8x64xi32>
    %28 = arith.cmpi eq, %27, %4 : vector<8x64xi32>
    %cst_11 = arith.constant 0.000000e+00 : f32
    %29 = vector.broadcast %cst_11 : f32 to vector<8x64xf32>
    %30 = arith.select %28, %2, %29 : vector<8x64xi1>, vector<8x64xf32>
    %cst_12 = arith.constant dense<0.000000e+00> : vector<8xf32>
    %31 = vector.multi_reduction <add>, %30, %cst_12 [1] : vector<8x64xf32> to vector<8xf32>
    %32 = vector.shape_cast %31 : vector<8xf32> to vector<8x1xf32>
    %33 = vector.extract_strided_slice %3 {offsets = [0, 4], sizes = [8, 1], strides = [1, 1]} : vector<8x8xi32> to vector<8x1xi32>
    %34 = vector.broadcast %33 : vector<8x1xi32> to vector<8x64xi32>
    %35 = arith.cmpi eq, %34, %4 : vector<8x64xi32>
    %cst_13 = arith.constant 0.000000e+00 : f32
    %36 = vector.broadcast %cst_13 : f32 to vector<8x64xf32>
    %37 = arith.select %35, %2, %36 : vector<8x64xi1>, vector<8x64xf32>
    %cst_14 = arith.constant dense<0.000000e+00> : vector<8xf32>
    %38 = vector.multi_reduction <add>, %37, %cst_14 [1] : vector<8x64xf32> to vector<8xf32>
    %39 = vector.shape_cast %38 : vector<8xf32> to vector<8x1xf32>
    %40 = vector.extract_strided_slice %3 {offsets = [0, 5], sizes = [8, 1], strides = [1, 1]} : vector<8x8xi32> to vector<8x1xi32>
    %41 = vector.broadcast %40 : vector<8x1xi32> to vector<8x64xi32>
    %42 = arith.cmpi eq, %41, %4 : vector<8x64xi32>
    %cst_15 = arith.constant 0.000000e+00 : f32
    %43 = vector.broadcast %cst_15 : f32 to vector<8x64xf32>
    %44 = arith.select %42, %2, %43 : vector<8x64xi1>, vector<8x64xf32>
    %cst_16 = arith.constant dense<0.000000e+00> : vector<8xf32>
    %45 = vector.multi_reduction <add>, %44, %cst_16 [1] : vector<8x64xf32> to vector<8xf32>
    %46 = vector.shape_cast %45 : vector<8xf32> to vector<8x1xf32>
    %47 = vector.extract_strided_slice %3 {offsets = [0, 6], sizes = [8, 1], strides = [1, 1]} : vector<8x8xi32> to vector<8x1xi32>
    %48 = vector.broadcast %47 : vector<8x1xi32> to vector<8x64xi32>
    %49 = arith.cmpi eq, %48, %4 : vector<8x64xi32>
    %cst_17 = arith.constant 0.000000e+00 : f32
    %50 = vector.broadcast %cst_17 : f32 to vector<8x64xf32>
    %51 = arith.select %49, %2, %50 : vector<8x64xi1>, vector<8x64xf32>
    %cst_18 = arith.constant dense<0.000000e+00> : vector<8xf32>
    %52 = vector.multi_reduction <add>, %51, %cst_18 [1] : vector<8x64xf32> to vector<8xf32>
    %53 = vector.shape_cast %52 : vector<8xf32> to vector<8x1xf32>
    %54 = vector.extract_strided_slice %3 {offsets = [0, 7], sizes = [8, 1], strides = [1, 1]} : vector<8x8xi32> to vector<8x1xi32>
    %55 = vector.broadcast %54 : vector<8x1xi32> to vector<8x64xi32>
    %56 = arith.cmpi eq, %55, %4 : vector<8x64xi32>
    %cst_19 = arith.constant 0.000000e+00 : f32
    %57 = vector.broadcast %cst_19 : f32 to vector<8x64xf32>
    %58 = arith.select %56, %2, %57 : vector<8x64xi1>, vector<8x64xf32>
    %cst_20 = arith.constant dense<0.000000e+00> : vector<8xf32>
    %59 = vector.multi_reduction <add>, %58, %cst_20 [1] : vector<8x64xf32> to vector<8xf32>
    %60 = vector.shape_cast %59 : vector<8xf32> to vector<8x1xf32>
    %61 = tpu.concatenate %11, %18, %25, %32, %39, %46, %53, %60 in 1 : vector<8x1xf32>, vector<8x1xf32>, vector<8x1xf32>, vector<8x1xf32>, vector<8x1xf32>, vector<8x1xf32>, vector<8x1xf32>, vector<8x1xf32> -> vector<8x8xf32>
    %c0_21 = arith.constant 0 : index
    %c0_22 = arith.constant 0 : index
    %62 = vector.load %arg4[%c0_21, %c0_22] : memref<8x8xf32, #tpu.memory_space<vmem>>, vector<8x8xf32>
    tpu.vector_store %arg4[%c0_21, %c0_22], %61 {strides = array<i32>} : memref<8x8xf32, #tpu.memory_space<vmem>>, vector<8x8xf32>,
    return
  }
  func.func @transform_0(%arg0: i32) -> (i32, i32) {
    %c0_i32 = arith.constant 0 : i32
    %c0_i32_0 = arith.constant 0 : i32
    return %arg0, %c0_i32 : i32, i32
  }
  func.func @transform_1(%arg0: i32) -> (i32, i32) {
    %c0_i32 = arith.constant 0 : i32
    %c0_i32_0 = arith.constant 0 : i32
    return %arg0, %c0_i32 : i32, i32
  }
  func.func @transform_2(%arg0: i32) -> (i32, i32) {
    %c0_i32 = arith.constant 0 : i32
    %c0_i32_0 = arith.constant 0 : i32
    %c0_i32_1 = arith.constant 0 : i32
    return %c0_i32, %c0_i32_0 : i32, i32
  }
  func.func @transform_3(%arg0: i32) -> (i32, i32) {
    %c0_i32 = arith.constant 0 : i32
    %c0_i32_0 = arith.constant 0 : i32
    return %arg0, %c0_i32 : i32, i32
  }
}

</mosaic_0001>

<bundles_post_ra>
// kernel: tpu_custom_call.1
= control target key start
LH: loop header
LB: loop body
LE: loop exit
PB: predicated region body
PF: predicated region fallthrough
CT: control target
= control target key end

     0   :  { %8 = vsyncpa [#allocation3], 0  ;;  %s467_s0 = inlined_call_operand.hbm [shape: f32[8,32], index: 0, kind: input, shape index: {}]   ;;  %s468_s1 = inlined_call_operand.hbm [shape: s32[8,8], index: 1, kind: input, shape index: {}]   ;;  %s469_s2 = inlined_call_operand.hbm [shape: f32[32,64], index: 2, kind: input, shape index: {}]   ;;  %s470_s3 = inlined_call_operand.hbm [shape: f32[8,8], index: 3, kind: output, shape index: {}]  }
   0x1   :  { %9 = vsyncpa [#allocation6], 0 }
   0x2   :  { %10 = vsyncpa [#allocation4], 0  ;;  %s374_s12 = smov [#allocation5]   ;;  %s375_s14 = smov [#allocation2]  }
   0x3   :  { %s27_s13 = sshll.u32 %s374_s12, 4  ;;  %s17_s15 = sshll.u32 %s375_s14, 4  ;;  %s28_s13 = int_to_ptr.vmem [resolvable:$true] %s27_s13  ;;  %s18_s15 = int_to_ptr.vmem [resolvable:$true] %s17_s15 }
   0x4   :  { %s280_s18 = scalar_lea.hbm %s468_s1, 128 }
   0x5   :  { %p281_p0 = scmp.ne.s32.totalorder %s468_s1, %s280_s18  ;;  %p284_p1 = scmp.lt.u32.totalorder %s280_s18, %s468_s1 }
   0x7   :  { %p286_p2 = pnand %p284_p1, %p281_p0 }
   0x9   :  { %289 = shalt.err (!%p286_p2)
}
   0xa   :  { %s290_s23 = scalar_lea.vmem %s28_s13, 128  ;;  %p295_p4 = scmp.lt.s32.totalorder %s28_s13, %s28_s13 }
   0xb   :  { %p291_p3 = scmp.ne.s32.totalorder %s28_s13, %s290_s23  ;;  %p296_p5 = scmp.lt.s32.totalorder %s290_s23, %s290_s23 }
   0xd   :  { %p297_p6 = por %p296_p5, %p295_p4 }
   0xf   :  { %p298_p7 = pnand %p297_p6, %p291_p3 }
  0x11   :  { %301 = shalt.err (!%p298_p7)
}
  0x12   :  { %30 = dma.hbm_to_vmem [thread:$0]  %s468_s1, 128, %s28_s13, [#allocation6]  }
  0x13   :  { %s302_s28 = scalar_lea.hbm %s467_s0, 128 }
  0x14   :  { %p303_p8 = scmp.ne.s32.totalorder %s467_s0, %s302_s28  ;;  %p306_p9 = scmp.lt.u32.totalorder %s302_s28, %s467_s0 }
  0x16   :  { %p308_p10 = pnand %p306_p9, %p303_p8 }
  0x18   :  { %311 = shalt.err (!%p308_p10)
}
  0x19   :  { %s312_s6 = scalar_lea.vmem %s18_s15, 128  ;;  %p317_p12 = scmp.lt.s32.totalorder %s18_s15, %s18_s15 }
  0x1a   :  { %p313_p11 = scmp.ne.s32.totalorder %s18_s15, %s312_s6  ;;  %p318_p13 = scmp.lt.s32.totalorder %s312_s6, %s312_s6 }
  0x1c   :  { %p319_p0 = por %p318_p13, %p317_p12 }
  0x1e   :  { %p320_p1 = pnand %p319_p0, %p313_p11 }
  0x20   :  { %323 = shalt.err (!%p320_p1)
}
  0x21   :  { %20 = dma.hbm_to_vmem [thread:$0]  %s467_s0, 128, %s18_s15, [#allocation3]  }
  0x22   :  { %s376_s8 = smov [#allocation7]   ;;  %s324_s12 = scalar_lea.hbm %s469_s2, 512 }
  0x23   :  { %s36_s9 = sshll.u32 %s376_s8, 4  ;;  %p325_p2 = scmp.ne.s32.totalorder %s469_s2, %s324_s12  ;;  %s37_s9 = int_to_ptr.vmem [resolvable:$true] %s36_s9 }
  0x24   :  { %p328_p3 = scmp.lt.u32.totalorder %s324_s12, %s469_s2 }
  0x26   :  { %p330_p4 = pnand %p328_p3, %p325_p2 }
  0x28   :  { %333 = shalt.err (!%p330_p4)
}
  0x29   :  { %s334_s18 = scalar_lea.vmem %s37_s9, 512  ;;  %p339_p6 = scmp.lt.s32.totalorder %s37_s9, %s37_s9 }
  0x2a   :  { %p335_p5 = scmp.ne.s32.totalorder %s37_s9, %s334_s18  ;;  %p340_p7 = scmp.lt.s32.totalorder %s334_s18, %s334_s18 }
  0x2c   :  { %p341_p8 = por %p340_p7, %p339_p6 }
  0x2e   :  { %p342_p9 = pnand %p341_p8, %p335_p5 }
  0x30   :  { %345 = shalt.err (!%p342_p9)
}
  0x31   :  { %s377_s0 = smov 128   ;;  %s378_s15 = smov 8  }
  0x32   :  { %42 = dma.hbm_to_vmem [thread:$0]  %s469_s2, 512, %s37_s9, [#allocation6], %s377_s0, %s377_s0, %s378_s15  }
  0x33   :  { %368 = dma.done.wait [#allocation3], 128  }
  0x34   :  { %369 = vsyncadd [#allocation3], 4294967168 }
  0x35   :  { %370 = dma.done.wait [#allocation6], 640  }
  0x36   :  { %371 = vsyncadd [#allocation6], 4294966656  ;;  %v379_v0 = vmov 0.0|0.0   ;;  %vm380_vm0 = vmmov 0   ;;  %v381_v1 = vmov 0.0   ;;  %v382_v2 = vmov 0  }
  0x37   :  { %248 = vmatprep.subr.bf16.mxu0 %v379_v0  ;;  %245 = vmatprep.mubr.msk.f32.mxu0 %vm380_vm0, %v381_v1  ;;  %v383_v3 = vmov 1   ;;  %v53_v4 = vld [vmem:[#allocation7] sm:$0xff]  ;;  %v54_v5 = vld [vmem:[#allocation7 + $0x8] sm:$0xff]  ;;  %v55_v6 = vld [vmem:[#allocation7 + $0x10] sm:$0xff]  ;;  %v384_v11 = vmov 2   ;;  %v385_v12 = vmov 3   ;;  %v132_v21 = vlaneseq }
  0x38   :  { %271 = vset.pattern.permute.xlu0 %v382_v2  ;;  %272 = vset.pattern.permute.xlu1 %v383_v3  ;;  %v249_v7 = vpack.c.bf16 %v54_v5, %v53_v4  ;;  %v56_v8 = vld [vmem:[#allocation7 + $0x18] sm:$0xff]  ;;  %v52_v13 = vld [vmem:[#allocation2] sm:$0xff]  ;;  %vm57_vm1 = vcmask 261120   ;;  %v386_v14 = vmov 4   ;;  %v387_v15 = vmov 7   ;;  %s390_s2 = smov [#allocation8]  }
  0x39   :  { %v131_v9 = vld [vmem:[#allocation5] sm:$0xff]  ;;  %v252_v10 = vpack.c.bf16 %v56_v8, %v55_v6  ;;  %v388_v16 = vmov 5   ;;  %v389_v17 = vmov 6   ;;  %v133_v24 = vand.u32 127, %v132_v21  ;;  %s221_s21 = sshll.u32 %s390_s2, 4  ;;  %s222_s21 = int_to_ptr.vmem [resolvable:$true] %s221_s21 }
  0x3a   :  { %135 = vperm.xlu0 %271, %v131_v9   ;;  %144 = vperm.xlu1 %272, %v131_v9   ;;  %vm139_vm3 = vcmask 523264   ;;  %vm199_vm11 = vcmask 7168   ;;  %vm201_vm12 = vcmask 15360   ;;  %vm203_vm13 = vcmask 23552   ;;  %s346_s22 = scalar_lea.vmem %s222_s21, 128  ;;  %p351_p11 = scmp.lt.s32.totalorder %s222_s21, %s222_s21 }
  0x3b   :  { %250 = vmatpush3.bf16.msra.mxu0 %v249_v7  ;;  %vm205_vm14 = vcmask 31744   ;;  %vm207_vm15 = vcmask 39936   ;;  %vm209_vm0 = vcmask 48128   ;;  %p347_p10 = scmp.ne.s32.totalorder %s222_s21, %s346_s22  ;;  %p352_p12 = scmp.lt.s32.totalorder %s346_s22, %s346_s22 }
  0x3c   :  { %251 = vmatprep.subr.bf16.mxu0 %v379_v0 }
  0x3d   :  { %p353_p13 = por %p352_p12, %p351_p11 }
  0x3e   :  { %273 = vset.pattern.permute.xlu0 %v384_v11  ;;  %274 = vset.pattern.permute.xlu1 %v385_v12 }
  0x3f   :  { %253 = vmatpush3.bf16.msra.mxu0 %v252_v10  ;;  %152 = vperm.xlu0 %273, %v131_v9   ;;  %p354_p0 = pnand %p353_p13, %p347_p10 }
  0x40   :  { %160 = vperm.xlu1 %274, %v131_v9  }
  0x42   :  { %246 = vmatmul.mubr.msk.f32.vlgmr.msra.gmra.mrb[0].mxu0 %vm57_vm1, %v52_v13  ;;  %vm211_vm1 = vcmask 56320  }
  0x43   :  { %275 = vset.pattern.permute.xlu0 %v386_v14 }
  0x44   :  { %168 = vperm.xlu0 %275, %v131_v9   ;;  %278 = vset.pattern.permute.xlu1 %v387_v15 }
  0x45   :  { %192 = vperm.xlu1 %278, %v131_v9  }
  0x48   :  { %276 = vset.pattern.permute.xlu0 %v388_v16 }
  0x49   :  { %176 = vperm.xlu0 %276, %v131_v9  }
  0x4d   :  { %277 = vset.pattern.permute.xlu0 %v389_v17 }
  0x4e   :  { %184 = vperm.xlu0 %277, %v131_v9  }
  0x52   :  { %279 = vset.pattern.permute.xlu0 %v387_v15 }
  0xb9   :  { %v136_v18 = vpop.permute.xlu0 %135  ;;  %v145_v22 = vpop.permute.xlu1 %144 }
  0xba   :  { %vm146_vm2 = vcmp.eq.s32.totalorder %v145_v22, %v133_v24  ;;  %vm137_vm4 = vcmp.eq.s32.totalorder %v136_v18, %v133_v24 }
  0xbe   :  { %v153_v19 = vpop.permute.xlu0 %152 }
  0xbf   :  { %v161_v25 = vpop.permute.xlu1 %160  ;;  %vm154_vm6 = vcmp.eq.s32.totalorder %v153_v19, %v133_v24 }
  0xc0   :  { %vm162_vm7 = vcmp.eq.s32.totalorder %v161_v25, %v133_v24 }
  0xc3   :  { %v169_v20 = vpop.permute.xlu0 %168 }
  0xc4   :  { %vm170_vm5 = vcmp.eq.s32.totalorder %v169_v20, %v133_v24  ;;  %v193_v35 = vpop.permute.xlu1 %192 }
  0xc5   :  { %vm194_vm10 = vcmp.eq.s32.totalorder %v193_v35, %v133_v24 }
  0xc8   :  { %v177_v23 = vpop.permute.xlu0 %176 }
  0xc9   :  { %vm178_vm9 = vcmp.eq.s32.totalorder %v177_v23, %v133_v24 }
  0xcd   :  { %v185_v27 = vpop.permute.xlu0 %184 }
  0xce   :  { %vm186_vm8 = vcmp.eq.s32.totalorder %v185_v27, %v133_v24 }
 0x115   :  { %v127_v26 = vpop.f32.mrb[0].mxu0 }
 0x116   :  { %v247_v28 = vpop.f32.mrb[1].mxu0  ;;  %v147_v29 = vsel %vm146_vm2, %v127_v26, 0.0  ;;  %v138_v30 = vsel %vm137_vm4, %v127_v26, 0.0  ;;  %v155_v33 = vsel %vm154_vm6, %v127_v26, 0.0  ;;  %v171_v34 = vsel %vm170_vm5, %v127_v26, 0.0 }
 0x117   :  { %v148_v31 = vsel %vm139_vm3, %v147_v29, 0.0  ;;  %v140_v32 = vsel %vm139_vm3, %v138_v30, 0.0  ;;  %v156_v36 = vsel %vm139_vm3, %v155_v33, 0.0  ;;  %v172_v37 = vsel %vm139_vm3, %v171_v34, 0.0 }
 0x118   :  { %149 = vadd.xlane.f32.xlu1 %v148_v31  ;;  %141 = vadd.xlane.f32.xlu0 %v140_v32  ;;  %v163_v38 = vsel %vm162_vm7, %v127_v26, 0.0  ;;  %v187_v39 = vsel %vm186_vm8, %v127_v26, 0.0  ;;  %v179_v42 = vsel %vm178_vm9, %v127_v26, 0.0  ;;  %v195_v43 = vsel %vm194_vm10, %v127_v26, 0.0 }
 0x119   :  { %v164_v40 = vsel %vm139_vm3, %v163_v38, 0.0  ;;  %v188_v41 = vsel %vm139_vm3, %v187_v39, 0.0  ;;  %v180_v44 = vsel %vm139_vm3, %v179_v42, 0.0  ;;  %v196_v45 = vsel %vm139_vm3, %v195_v43, 0.0 }
 0x11a   :  { %vm213_vm2 = vcmask 64512  }
 0x11c   :  { %157 = vadd.xlane.f32.xlu1 %v156_v36  ;;  %173 = vadd.xlane.f32.xlu0 %v172_v37 }
 0x120   :  { %165 = vadd.xlane.f32.xlu1 %v164_v40  ;;  %189 = vadd.xlane.f32.xlu0 %v188_v41 }
 0x124   :  { %181 = vadd.xlane.f32.xlu1 %v180_v44  ;;  %197 = vadd.xlane.f32.xlu0 %v196_v45 }
 0x1a5   :  { %v150_v46 = vpop.xlane.xlu1 %149  ;;  %v142_v47 = vpop.xlane.xlu0 %141 }
 0x1a6   :  { %v200_v50 = vsel %vm199_vm11, %v142_v47, %v150_v46 }
 0x1a9   :  { %v158_v48 = vpop.xlane.xlu1 %157  ;;  %v174_v49 = vpop.xlane.xlu0 %173 }
 0x1aa   :  { %v202_v51 = vsel %vm201_vm12, %v200_v50, %v158_v48 }
 0x1ad   :  { %v166_v52 = vpop.xlane.xlu1 %165  ;;  %v190_v53 = vpop.xlane.xlu0 %189 }
 0x1ae   :  { %v204_v54 = vsel %vm203_vm13, %v202_v51, %v166_v52 }
 0x1af   :  { %v206_v56 = vsel %vm205_vm14, %v204_v54, %v174_v49 }
 0x1b1   :  { %v182_v55 = vpop.xlane.xlu1 %181  ;;  %v198_v59 = vpop.xlane.xlu0 %197 }
 0x1b2   :  { %v208_v57 = vsel %vm207_vm15, %v206_v56, %v182_v55 }
 0x1b3   :  { %v210_v58 = vsel %vm209_vm0, %v208_v57, %v190_v53 }
 0x1b4   :  { %v212_v60 = vsel %vm211_vm1, %v210_v58, %v198_v59 }
 0x1b5   :  { %214 = vst.msk [vmem:[#allocation8] sm:$0xff] %vm213_vm2, %v212_v60 }
 0x1b6   :  { %357 = shalt.err (!%p354_p0)
}
 0x1b7   :  { %s358_s25 = scalar_lea.hbm %s470_s3, 128 }
 0x1b8   :  { %p359_p1 = scmp.ne.s32.totalorder %s470_s3, %s358_s25  ;;  %p362_p2 = scmp.lt.u32.totalorder %s358_s25, %s470_s3 }
 0x1ba   :  { %p364_p3 = pnand %p362_p2, %p359_p1 }
 0x1bc   :  { %367 = shalt.err (!%p364_p3)
}
 0x1bd   :  { %224 = dma.vmem_to_hbm [thread:$0]  %s222_s21, 128, %s470_s3, [#allocation4]  }
 0x1be   :  { %372 = dma.done.wait [#allocation4], 128  }
 0x1bf   :  { %373 = vsyncadd [#allocation4], 4294967168 }
 0x1c0   :  { %228 = vsyncpa [#allocation3], 1 }
 0x1c1   :  { %229 = vsyncpa [#allocation6], 1 }
 0x1c2   :  { %230 = vsyncpa [#allocation4], 1 }

</bundles_post_ra>
